<compile_context>
chip_gen: v7x
topology: tpu7x:2x2x1
jax: 0.10.0
libtpu: 0.0.40
codegen_flags: <defaults>
</compile_context>

<pallas_src>
import functools

import jax
import jax.numpy as jnp
from jax.experimental import pallas as pl
from jax.experimental.pallas import tpu as pltpu


# ------------------------------ kernel ------------------------------------- #

def _label_smoothing_kernel(pred_ref, tgt_ref, loss_ref, cnt_ref,
                            loss_acc, cnt_acc, m_acc, l_acc, w_acc, *,
                            smoothing, ignore_index, n_classes, n_rows,
                            row_tile, row_steps, zero_smoothing):
    p = pl.program_id(0)            # cross-TensorCore slice ("parallel")
    i = pl.program_id(1)            # row-tile step within the slice
    j = pl.program_id(2)            # class-chunk step (online softmax)
    last_i = pl.num_programs(1) - 1
    last_j = pl.num_programs(2) - 1

    @pl.when(jnp.logical_and(i == 0, j == 0))
    def _():
        loss_acc[...] = jnp.zeros_like(loss_acc)
        cnt_acc[...] = jnp.zeros_like(cnt_acc)

    @pl.when(j == 0)
    def _():
        m_acc[...] = jnp.full(m_acc.shape, -jnp.inf, jnp.float32)
        l_acc[...] = jnp.zeros_like(l_acc)
        w_acc[...] = jnp.zeros_like(w_acc)

    x = pred_ref[...].astype(jnp.float32)        # (T, Cb)
    t = tgt_ref[...]                             # (T, 1) int32
    T, Cb = x.shape

    # Rows past the true N (ragged tail / clamped duplicate blocks) are masked
    # BEFORE the exp so undefined padding can never produce NaN/Inf.
    row_ids = (p * row_steps + i) * row_tile + \
        jax.lax.broadcasted_iota(jnp.int32, (T, 1), 0)
    in_bounds = row_ids < n_rows                 # (T, 1) bool
    x = jnp.where(in_bounds, x, 0.0)

    # Online log-sum-exp over class chunks (lane reduce -> XLU, exp -> EUP).
    m_chunk = jnp.max(x, axis=-1, keepdims=True)
    m_new = jnp.maximum(m_acc[...], m_chunk)
    l_acc[...] = (l_acc[...] * jnp.exp(m_acc[...] - m_new)
                  + jnp.sum(jnp.exp(x - m_new), axis=-1, keepdims=True))
    m_acc[...] = m_new

    # Fused weighted reduction (single compare/select + single lane reduce):
    #   w_c = 1[c == t]                        (smoothing == 0)
    #   w_c = off + (1 - s - off) * 1[c == t]  (smoothing > 0), off = s/(C-1)
    # In both cases sum_c w_c == 1, so the per-row loss = -(sum_c w_c*x_c - lse).
    col = j * Cb + jax.lax.broadcasted_iota(jnp.int32, (T, Cb), 1)
    is_tgt = col == t
    if zero_smoothing:
        w_acc[...] += jnp.sum(jnp.where(is_tgt, x, 0.0), axis=-1, keepdims=True)
    else:
        off = smoothing / (n_classes - 1)
        weights = jnp.where(is_tgt, 1.0 - smoothing, off)
        w_acc[...] += jnp.sum(x * weights, axis=-1, keepdims=True)

    @pl.when(j == last_j)
    def _():
        valid = jnp.logical_and(t != ignore_index, in_bounds).astype(jnp.float32)
        lse = jnp.log(l_acc[...]) + m_acc[...]
        row_loss = -valid * (w_acc[...] - lse)
        loss_acc[...] = loss_acc[...] + jnp.sum(row_loss, axis=0, keepdims=True)
        cnt_acc[...] = cnt_acc[...] + jnp.sum(valid, axis=0, keepdims=True)

    @pl.when(jnp.logical_and(i == last_i, j == last_j))
    def _():
        loss_ref[0] = loss_acc[...]
        cnt_ref[0] = cnt_acc[...]


# ------------------------------ helpers ------------------------------------ #

def _round_up(x, m):
    return ((x + m - 1) // m) * m


def _vmem_capacity_bytes():
    try:
        return int(pltpu.get_tpu_info().vmem_capacity_bytes)
    except Exception:
        return 64 * 1024 * 1024   # conservative fallback (v7x per-core VMEM)


def _num_tensorcores():
    """Best-effort TensorCore-per-chip query; safe default is 1 (v5e/v6e)."""
    try:
        info = pltpu.get_tpu_info()
        for attr in ("num_cores", "core_count", "num_tensorcores",
                     "tensorcore_count", "cores_per_chip"):
            v = getattr(info, attr, None)
            if v:
                return int(v)
    except Exception:
        pass
    try:
        v = getattr(jax.devices()[0], "num_cores", None)
        if v:
            return int(v)
    except Exception:
        pass
    return 1


def _pick_class_tile(n_classes, target_lanes=8192):
    """Largest multiple-of-128 divisor of C that is <= target_lanes, else C."""
    if n_classes <= target_lanes or n_classes % 128 != 0:
        # TODO(synk): vocab-scale C that is not 128-divisible falls back to a
        # single full-C block with a small row tile; add lane-tail masking to
        # chunk that case too.
        return n_classes
    best = 128
    d = 128
    while d <= target_lanes:
        if n_classes % d == 0:
            best = d
        d += 128
    return best


# ------------------------------ wrapper ------------------------------------ #

def label_smoothing_loss(pred, target, *, ignore_index, label_smoothing,
                         row_tile=None, class_tile=None):
    """pred: (N, C) float (any float dtype), target: (N,) int.

    Matches LabelSmoothingLoss.forward:
      * label_smoothing == 0 -> F.cross_entropy(..., ignore_index): mean over
        non-ignored rows (0/0 = NaN if every row is ignored, same as PyTorch).
      * label_smoothing > 0  -> torch.mean over ALL rows of the smoothed NLL,
        with ignore_index rows contributing 0 (i.e. divide by the true N).
    """
    N, C = pred.shape
    itemsize = jnp.dtype(pred.dtype).itemsize
    zero_smoothing = (float(label_smoothing) == 0.0)

    # Sublane granularity for the pred dtype (f32: 8, bf16: 16, int8/fp8: 32).
    sublane = 8 * max(1, 4 // max(1, itemsize))

    # ---- class-chunk (lane) tiling ---------------------------------------- #
    if class_tile is None:
        class_tile = _pick_class_tile(C)
    class_tile = int(class_tile)
    if class_tile != C:
        assert class_tile % 128 == 0 and C % class_tile == 0, (
            "class_tile must be a multiple of 128 that divides C")
    class_steps = pl.cdiv(C, class_tile)
    lanes_blk = _round_up(class_tile, 128)

    # ---- VMEM-budget-aware row tile (includes in-kernel f32 temps) -------- #
    vmem_cap = _vmem_capacity_bytes()
    budget = int(0.8 * vmem_cap)
    per_row_bytes = (2 * lanes_blk * itemsize     # double-buffered pred tile
                     + 2 * 128 * 4                # double-buffered target tile
                     + 5 * lanes_blk * 4          # f32/i32 (rows, lanes) temps
                     + 10 * 128 * 4)              # (rows, 1) scratch + temps
    if row_tile is None:
        row_tile = budget // per_row_bytes
    row_tile = max(sublane, (int(row_tile) // sublane) * sublane)

    # ---- split rows across TensorCores (v7x); single slice on v5e/v6e ----- #
    num_parallel = max(1, min(_num_tensorcores(), 2))
    if N <= sublane:
        num_parallel = 1
    rows_per_slice = pl.cdiv(N, num_parallel)
    row_tile = min(row_tile, _round_up(rows_per_slice, sublane))
    row_steps = pl.cdiv(rows_per_slice, row_tile)
    # Rebalance so the per-slice padding is at most one sublane.
    row_tile = _round_up(pl.cdiv(rows_per_slice, row_steps), sublane)
    row_steps = pl.cdiv(rows_per_slice, row_tile)
    last_block = pl.cdiv(N, row_tile) - 1         # last block with real rows

    tgt2d = target.astype(jnp.int32).reshape(N, 1)

    kernel = functools.partial(
        _label_smoothing_kernel,
        smoothing=float(label_smoothing),
        ignore_index=int(ignore_index),
        n_classes=int(C),
        n_rows=int(N),
        row_tile=int(row_tile),
        row_steps=int(row_steps),
        zero_smoothing=zero_smoothing,
    )

    # Clamp the block index so an uneven parallel split never issues a DMA for
    # a fully out-of-bounds block; duplicated rows are masked in-kernel.
    def pred_map(p, i, j, _rs=row_steps, _lb=last_block):
        return (jnp.minimum(p * _rs + i, _lb), j)

    def tgt_map(p, i, j, _rs=row_steps, _lb=last_block):
        return (jnp.minimum(p * _rs + i, _lb), 0)

    vmem_limit = int(min(max(per_row_bytes * row_tile + (4 << 20), 16 << 20),
                         int(vmem_cap * 0.9)))

    cost = pl.CostEstimate(
        flops=8 * N * C,
        transcendentals=N * C + 4 * N,
        bytes_accessed=N * C * itemsize + N * 4 + 8 * num_parallel,
    )

    loss_parts, cnt_parts = pl.pallas_call(
        kernel,
        out_shape=(jax.ShapeDtypeStruct((num_parallel, 1, 1), jnp.float32),
                   jax.ShapeDtypeStruct((num_parallel, 1, 1), jnp.float32)),
        grid_spec=pltpu.PrefetchScalarGridSpec(
            num_scalar_prefetch=0,
            grid=(num_parallel, row_steps, class_steps),
            in_specs=[
                pl.BlockSpec((row_tile, class_tile), pred_map),
                pl.BlockSpec((row_tile, 1), tgt_map),
            ],
            out_specs=[
                pl.BlockSpec((1, 1, 1), lambda p, i, j: (p, 0, 0)),
                pl.BlockSpec((1, 1, 1), lambda p, i, j: (p, 0, 0)),
            ],
            scratch_shapes=[
                pltpu.VMEM((1, 1), jnp.float32),          # running loss sum
                pltpu.VMEM((1, 1), jnp.float32),          # running valid count
                pltpu.VMEM((row_tile, 1), jnp.float32),   # online max
                pltpu.VMEM((row_tile, 1), jnp.float32),   # online sum-exp
                pltpu.VMEM((row_tile, 1), jnp.float32),   # weighted sum
            ],
        ),
        compiler_params=pltpu.CompilerParams(
            # TODO(synk): if a v7x profile shows the leading axis not splitting
            # across both TensorCores, switch it to pltpu.CORE_PARALLEL.
            dimension_semantics=("parallel", "arbitrary", "arbitrary"),
            vmem_limit_bytes=vmem_limit),
        cost_estimate=cost,
    )(pred, tgt2d)

    total = jnp.sum(loss_parts)
    if zero_smoothing:
        # cross_entropy semantics: mean over non-ignored rows.
        return total / jnp.sum(cnt_parts)
    # smoothing > 0: torch.mean over ALL (true) rows.
    return total / jnp.float32(N)


# ----------------------------- references ---------------------------------- #

def _reference_smoothed(pred, target, *, ignore_index, label_smoothing):
    N, C = pred.shape
    log_probs = jax.nn.log_softmax(pred.astype(jnp.float32), axis=-1)
    one_hot = jax.nn.one_hot(target, C, dtype=jnp.float32)
    s = label_smoothing
    one_hot = one_hot * (1.0 - s) + (1.0 - one_hot) * s / (C - 1)
    one_hot = one_hot * (target != ignore_index)[:, None].astype(jnp.float32)
    return jnp.mean(jnp.sum(-one_hot * log_probs, axis=-1))


def _reference_ce(pred, target, *, ignore_index):
    C = pred.shape[-1]
    log_probs = jax.nn.log_softmax(pred.astype(jnp.float32), axis=-1)
    nll = -jnp.sum(jax.nn.one_hot(target, C, dtype=jnp.float32) * log_probs,
                   axis=-1)
    valid = (target != ignore_index).astype(jnp.float32)
    return jnp.sum(nll * valid) / jnp.sum(valid)


if __name__ == "__main__":
    IGNORE_INDEX = 0
    LABEL_SMOOTHING = 0.1

    key = jax.random.PRNGKey(0)
    k1, k2, k3, k4, k5, k6 = jax.random.split(key, 6)

    # Case 1: smoothing > 0, f32, N=16 (batch=2 x seq=8 flattened), C=32.
    N, C = 16, 32
    pred = jax.random.normal(k1, (N, C), dtype=jnp.float32)
    target = jax.random.randint(k2, (N,), 0, C, dtype=jnp.int32)
    target = target.at[3].set(IGNORE_INDEX).at[10].set(IGNORE_INDEX)
    loss = jax.block_until_ready(
        label_smoothing_loss(pred, target, ignore_index=IGNORE_INDEX,
                             label_smoothing=LABEL_SMOOTHING))
    ref = _reference_smoothed(pred, target, ignore_index=IGNORE_INDEX,
                              label_smoothing=LABEL_SMOOTHING)
    assert jnp.allclose(loss, ref, atol=1e-5, rtol=1e-5), (loss, ref)

    # Case 2: smoothing == 0 (cross-entropy path), ragged N=13 exercises the
    # in-kernel row masking (no wrapper-side padding copy anymore).
    N2 = 13
    pred2 = jax.random.normal(k3, (N2, C), dtype=jnp.float32)
    target2 = jax.random.randint(k4, (N2,), 0, C, dtype=jnp.int32)
    target2 = target2.at[5].set(IGNORE_INDEX)
    loss2 = jax.block_until_ready(
        label_smoothing_loss(pred2, target2, ignore_index=IGNORE_INDEX,
                             label_smoothing=0.0))
    ref2 = _reference_ce(pred2, target2, ignore_index=IGNORE_INDEX)
    assert jnp.allclose(loss2, ref2, atol=1e-5, rtol=1e-5), (loss2, ref2)

    # Case 3: native bf16 input (no wrapper upcast; kernel casts per chunk).
    pred_bf16 = pred.astype(jnp.bfloat16)
    loss3 = jax.block_until_ready(
        label_smoothing_loss(pred_bf16, target, ignore_index=IGNORE_INDEX,
                             label_smoothing=LABEL_SMOOTHING))
    ref3 = _reference_smoothed(pred_bf16, target, ignore_index=IGNORE_INDEX,
                               label_smoothing=LABEL_SMOOTHING)
    assert jnp.allclose(loss3, ref3, atol=1e-4, rtol=1e-4), (loss3, ref3)

    # Case 4: class-chunked online-softmax path (C=256 split into 128-lane
    # chunks) with a ragged N=21 and ignored rows.
    N4, C4 = 21, 256
    pred4 = jax.random.normal(k5, (N4, C4), dtype=jnp.float32)
    target4 = jax.random.randint(k6, (N4,), 0, C4, dtype=jnp.int32)
    target4 = target4.at[2].set(IGNORE_INDEX).at[17].set(IGNORE_INDEX)
    loss4 = jax.block_until_ready(
        label_smoothing_loss(pred4, target4, ignore_index=IGNORE_INDEX,
                             label_smoothing=LABEL_SMOOTHING,
                             class_tile=128))
    ref4 = _reference_smoothed(pred4, target4, ignore_index=IGNORE_INDEX,
                               label_smoothing=LABEL_SMOOTHING)
    assert jnp.allclose(loss4, ref4, atol=1e-5, rtol=1e-5), (loss4, ref4)

    print("KERNEL_OK")
</pallas_src>

<mosaic_0001>
module attributes {stable_mosaic.version = 11 : i64} {
  func.func @_label_smoothing_kernel(%arg0: i32, %arg1: i32, %arg2: i32, %arg3: memref<16x32xf32, #tpu.memory_space<vmem>>, %arg4: memref<16x1xi32, #tpu.memory_space<vmem>>, %arg5: memref<1x1x1xf32, #tpu.memory_space<vmem>>, %arg6: memref<1x1x1xf32, #tpu.memory_space<vmem>>, %arg7: memref<1x1xf32, #tpu.memory_space<vmem>>, %arg8: memref<1x1xf32, #tpu.memory_space<vmem>>, %arg9: memref<16x1xf32, #tpu.memory_space<vmem>>, %arg10: memref<16x1xf32, #tpu.memory_space<vmem>>, %arg11: memref<16x1xf32, #tpu.memory_space<vmem>>) attributes {dimension_semantics = [#tpu.dimension_semantics<parallel>, #tpu.dimension_semantics<arbitrary>, #tpu.dimension_semantics<arbitrary>], iteration_bounds = array<i64: 1, 1, 1>, scalar_prefetch = 0 : i64, scratch_operands = 5 : i64, tpu.core_type = #tpu.core_type<tc>, window_params = [{transform_indices = @transform_0, window_bounds = array<i64: 16, 32>}, {transform_indices = @transform_1, window_bounds = array<i64: 16, 1>}, {transform_indices = @transform_2, window_bounds = array<i64: 1, 1, 1>}, {transform_indices = @transform_3, window_bounds = array<i64: 1, 1, 1>}]} {
    %c0_i32 = arith.constant 0 : i32
    %0 = arith.cmpi eq, %arg1, %c0_i32 : i32
    %c0_i32_0 = arith.constant 0 : i32
    %1 = arith.cmpi eq, %arg2, %c0_i32_0 : i32
    %2 = arith.andi %0, %1 : i1
    %3 = arith.extui %2 : i1 to i32
    %c0_i32_1 = arith.constant 0 : i32
    %4 = arith.cmpi ne, %3, %c0_i32_1 : i32
    scf.if %4 {
      %cst_32 = arith.constant 0.000000e+00 : f32
      %62 = vector.broadcast %cst_32 : f32 to vector<1x1xf32>
      %c0_33 = arith.constant 0 : index
      %c0_34 = arith.constant 0 : index
      %63 = vector.load %arg7[%c0_33, %c0_34] : memref<1x1xf32, #tpu.memory_space<vmem>>, vector<1x1xf32>
      tpu.vector_store %arg7[%c0_33, %c0_34], %62 {strides = array<i32>} : memref<1x1xf32, #tpu.memory_space<vmem>>, vector<1x1xf32>,
      %cst_35 = arith.constant 0.000000e+00 : f32
      %64 = vector.broadcast %cst_35 : f32 to vector<1x1xf32>
      %c0_36 = arith.constant 0 : index
      %c0_37 = arith.constant 0 : index
      %65 = vector.load %arg8[%c0_36, %c0_37] : memref<1x1xf32, #tpu.memory_space<vmem>>, vector<1x1xf32>
      tpu.vector_store %arg8[%c0_36, %c0_37], %64 {strides = array<i32>} : memref<1x1xf32, #tpu.memory_space<vmem>>, vector<1x1xf32>,
    } else {
    }
    %c0_i32_2 = arith.constant 0 : i32
    %5 = arith.cmpi eq, %arg2, %c0_i32_2 : i32
    %6 = arith.extui %5 : i1 to i32
    %c0_i32_3 = arith.constant 0 : i32
    %7 = arith.cmpi ne, %6, %c0_i32_3 : i32
    scf.if %7 {
      %cst_32 = arith.constant 0xFF800000 : f32
      %62 = vector.broadcast %cst_32 : f32 to vector<16x1xf32>
      %c0_33 = arith.constant 0 : index
      %c0_34 = arith.constant 0 : index
      %63 = vector.load %arg9[%c0_33, %c0_34] : memref<16x1xf32, #tpu.memory_space<vmem>>, vector<16x1xf32>
      tpu.vector_store %arg9[%c0_33, %c0_34], %62 {strides = array<i32>} : memref<16x1xf32, #tpu.memory_space<vmem>>, vector<16x1xf32>,
      %cst_35 = arith.constant 0.000000e+00 : f32
      %64 = vector.broadcast %cst_35 : f32 to vector<16x1xf32>
      %c0_36 = arith.constant 0 : index
      %c0_37 = arith.constant 0 : index
      %65 = vector.load %arg10[%c0_36, %c0_37] : memref<16x1xf32, #tpu.memory_space<vmem>>, vector<16x1xf32>
      tpu.vector_store %arg10[%c0_36, %c0_37], %64 {strides = array<i32>} : memref<16x1xf32, #tpu.memory_space<vmem>>, vector<16x1xf32>,
      %cst_38 = arith.constant 0.000000e+00 : f32
      %66 = vector.broadcast %cst_38 : f32 to vector<16x1xf32>
      %c0_39 = arith.constant 0 : index
      %c0_40 = arith.constant 0 : index
      %67 = vector.load %arg11[%c0_39, %c0_40] : memref<16x1xf32, #tpu.memory_space<vmem>>, vector<16x1xf32>
      tpu.vector_store %arg11[%c0_39, %c0_40], %66 {strides = array<i32>} : memref<16x1xf32, #tpu.memory_space<vmem>>, vector<16x1xf32>,
    } else {
    }
    %c0 = arith.constant 0 : index
    %c0_4 = arith.constant 0 : index
    %8 = vector.load %arg3[%c0, %c0_4] : memref<16x32xf32, #tpu.memory_space<vmem>>, vector<16x32xf32>
    %c0_5 = arith.constant 0 : index
    %c0_6 = arith.constant 0 : index
    %9 = vector.load %arg4[%c0_5, %c0_6] : memref<16x1xi32, #tpu.memory_space<vmem>>, vector<16x1xi32>
    %c1_i32 = arith.constant 1 : i32
    %10 = arith.muli %arg0, %c1_i32 : i32
    %11 = arith.addi %10, %arg1 : i32
    %c16_i32 = arith.constant 16 : i32
    %12 = arith.muli %11, %c16_i32 : i32
    %13 = tpu.iota {dimensions = array<i32: 0>} : vector<16x1xi32>
    %14 = vector.broadcast %12 : i32 to vector<16x1xi32>
    %15 = arith.addi %14, %13 : vector<16x1xi32>
    %c16_i32_7 = arith.constant 16 : i32
    %16 = vector.broadcast %c16_i32_7 : i32 to vector<16x1xi32>
    %17 = arith.cmpi slt, %15, %16 : vector<16x1xi32>
    %cst = arith.constant 0.000000e+00 : f32
    %18 = vector.shape_cast %17 : vector<16x1xi1> to vector<16x1xi1>
    %19 = vector.broadcast %18 : vector<16x1xi1> to vector<16x32xi1>
    %20 = vector.broadcast %cst : f32 to vector<16x32xf32>
    %21 = arith.select %19, %8, %20 : vector<16x32xi1>, vector<16x32xf32>
    %cst_8 = arith.constant dense<0xFF800000> : vector<16xf32>
    %22 = vector.multi_reduction <maximumf>, %21, %cst_8 [1] : vector<16x32xf32> to vector<16xf32>
    %23 = vector.shape_cast %22 : vector<16xf32> to vector<16x1xf32>
    %c0_9 = arith.constant 0 : index
    %c0_10 = arith.constant 0 : index
    %24 = vector.load %arg9[%c0_9, %c0_10] : memref<16x1xf32, #tpu.memory_space<vmem>>, vector<16x1xf32>
    %25 = arith.maximumf %24, %23 : vector<16x1xf32>
    %c0_11 = arith.constant 0 : index
    %c0_12 = arith.constant 0 : index
    %26 = vector.load %arg10[%c0_11, %c0_12] : memref<16x1xf32, #tpu.memory_space<vmem>>, vector<16x1xf32>
    %c0_13 = arith.constant 0 : index
    %c0_14 = arith.constant 0 : index
    %27 = vector.load %arg9[%c0_13, %c0_14] : memref<16x1xf32, #tpu.memory_space<vmem>>, vector<16x1xf32>
    %28 = arith.subf %27, %25 : vector<16x1xf32>
    %29 = math.exp %28 : vector<16x1xf32>
    %30 = arith.mulf %26, %29 : vector<16x1xf32>
    %31 = vector.broadcast %25 : vector<16x1xf32> to vector<16x32xf32>
    %32 = arith.subf %21, %31 : vector<16x32xf32>
    %33 = math.exp %32 : vector<16x32xf32>
    %cst_15 = arith.constant dense<0.000000e+00> : vector<16xf32>
    %34 = vector.multi_reduction <add>, %33, %cst_15 [1] : vector<16x32xf32> to vector<16xf32>
    %35 = vector.shape_cast %34 : vector<16xf32> to vector<16x1xf32>
    %36 = arith.addf %30, %35 : vector<16x1xf32>
    %c0_16 = arith.constant 0 : index
    %c0_17 = arith.constant 0 : index
    %37 = vector.load %arg10[%c0_16, %c0_17] : memref<16x1xf32, #tpu.memory_space<vmem>>, vector<16x1xf32>
    tpu.vector_store %arg10[%c0_16, %c0_17], %36 {strides = array<i32>} : memref<16x1xf32, #tpu.memory_space<vmem>>, vector<16x1xf32>,
    %c0_18 = arith.constant 0 : index
    %c0_19 = arith.constant 0 : index
    %38 = vector.load %arg9[%c0_18, %c0_19] : memref<16x1xf32, #tpu.memory_space<vmem>>, vector<16x1xf32>
    tpu.vector_store %arg9[%c0_18, %c0_19], %25 {strides = array<i32>} : memref<16x1xf32, #tpu.memory_space<vmem>>, vector<16x1xf32>,
    %c32_i32 = arith.constant 32 : i32
    %39 = arith.muli %arg2, %c32_i32 : i32
    %40 = tpu.iota {dimensions = array<i32: 1>} : vector<16x32xi32>
    %41 = vector.broadcast %39 : i32 to vector<16x32xi32>
    %42 = arith.addi %41, %40 : vector<16x32xi32>
    %43 = vector.broadcast %9 : vector<16x1xi32> to vector<16x32xi32>
    %44 = arith.cmpi eq, %42, %43 : vector<16x32xi32>
    %cst_20 = arith.constant 0.899999976 : f32
    %cst_21 = arith.constant 0.0032258064 : f32
    %45 = vector.broadcast %cst_20 : f32 to vector<16x32xf32>
    %46 = vector.broadcast %cst_21 : f32 to vector<16x32xf32>
    %47 = arith.select %44, %45, %46 : vector<16x32xi1>, vector<16x32xf32>
    %c0_22 = arith.constant 0 : index
    %c0_23 = arith.constant 0 : index
    %48 = vector.load %arg11[%c0_22, %c0_23] : memref<16x1xf32, #tpu.memory_space<vmem>>, vector<16x1xf32>
    %49 = arith.mulf %21, %47 : vector<16x32xf32>
    %cst_24 = arith.constant dense<0.000000e+00> : vector<16xf32>
    %50 = vector.multi_reduction <add>, %49, %cst_24 [1] : vector<16x32xf32> to vector<16xf32>
    %51 = vector.shape_cast %50 : vector<16xf32> to vector<16x1xf32>
    %52 = arith.addf %48, %51 : vector<16x1xf32>
    %c0_25 = arith.constant 0 : index
    %c0_26 = arith.constant 0 : index
    %53 = vector.load %arg11[%c0_25, %c0_26] : memref<16x1xf32, #tpu.memory_space<vmem>>, vector<16x1xf32>
    tpu.vector_store %arg11[%c0_25, %c0_26], %52 {strides = array<i32>} : memref<16x1xf32, #tpu.memory_space<vmem>>, vector<16x1xf32>,
    %c0_i32_27 = arith.constant 0 : i32
    %54 = arith.cmpi eq, %arg2, %c0_i32_27 : i32
    %55 = arith.extui %54 : i1 to i32
    %c0_i32_28 = arith.constant 0 : i32
    %56 = arith.cmpi ne, %55, %c0_i32_28 : i32
    scf.if %56 {
      %c0_i32_32 = arith.constant 0 : i32
      %62 = vector.broadcast %c0_i32_32 : i32 to vector<16x1xi32>
      %63 = arith.cmpi ne, %9, %62 : vector<16x1xi32>
      %64 = arith.andi %63, %17 : vector<16x1xi1>
      %65 = arith.extui %64 : vector<16x1xi1> to vector<16x1xi32>
      %66 = arith.sitofp %65 : vector<16x1xi32> to vector<16x1xf32>
      %c0_33 = arith.constant 0 : index
      %c0_34 = arith.constant 0 : index
      %67 = vector.load %arg10[%c0_33, %c0_34] : memref<16x1xf32, #tpu.memory_space<vmem>>, vector<16x1xf32>
      %68 = math.log %67 : vector<16x1xf32>
      %c0_35 = arith.constant 0 : index
      %c0_36 = arith.constant 0 : index
      %69 = vector.load %arg9[%c0_35, %c0_36] : memref<16x1xf32, #tpu.memory_space<vmem>>, vector<16x1xf32>
      %70 = arith.addf %68, %69 : vector<16x1xf32>
      %cst_37 = arith.constant 0.000000e+00 : f32
      %71 = vector.broadcast %cst_37 : f32 to vector<16x1xf32>
      %72 = arith.subf %71, %66 : vector<16x1xf32>
      %c0_38 = arith.constant 0 : index
      %c0_39 = arith.constant 0 : index
      %73 = vector.load %arg11[%c0_38, %c0_39] : memref<16x1xf32, #tpu.memory_space<vmem>>, vector<16x1xf32>
      %74 = arith.subf %73, %70 : vector<16x1xf32>
      %75 = arith.mulf %72, %74 : vector<16x1xf32>
      %c0_40 = arith.constant 0 : index
      %c0_41 = arith.constant 0 : index
      %76 = vector.load %arg7[%c0_40, %c0_41] : memref<1x1xf32, #tpu.memory_space<vmem>>, vector<1x1xf32>
      %cst_42 = arith.constant dense<0.000000e+00> : vector<1xf32>
      %77 = vector.multi_reduction <add>, %75, %cst_42 [0] : vector<16x1xf32> to vector<1xf32>
      %78 = vector.shape_cast %77 : vector<1xf32> to vector<1x1xf32>
      %79 = arith.addf %76, %78 : vector<1x1xf32>
      %c0_43 = arith.constant 0 : index
      %c0_44 = arith.constant 0 : index
      %80 = vector.load %arg7[%c0_43, %c0_44] : memref<1x1xf32, #tpu.memory_space<vmem>>, vector<1x1xf32>
      tpu.vector_store %arg7[%c0_43, %c0_44], %79 {strides = array<i32>} : memref<1x1xf32, #tpu.memory_space<vmem>>, vector<1x1xf32>,
      %c0_45 = arith.constant 0 : index
      %c0_46 = arith.constant 0 : index
      %81 = vector.load %arg8[%c0_45, %c0_46] : memref<1x1xf32, #tpu.memory_space<vmem>>, vector<1x1xf32>
      %cst_47 = arith.constant dense<0.000000e+00> : vector<1xf32>
      %82 = vector.multi_reduction <add>, %66, %cst_47 [0] : vector<16x1xf32> to vector<1xf32>
      %83 = vector.shape_cast %82 : vector<1xf32> to vector<1x1xf32>
      %84 = arith.addf %81, %83 : vector<1x1xf32>
      %c0_48 = arith.constant 0 : index
      %c0_49 = arith.constant 0 : index
      %85 = vector.load %arg8[%c0_48, %c0_49] : memref<1x1xf32, #tpu.memory_space<vmem>>, vector<1x1xf32>
      tpu.vector_store %arg8[%c0_48, %c0_49], %84 {strides = array<i32>} : memref<1x1xf32, #tpu.memory_space<vmem>>, vector<1x1xf32>,
    } else {
    }
    %c0_i32_29 = arith.constant 0 : i32
    %57 = arith.cmpi eq, %arg1, %c0_i32_29 : i32
    %c0_i32_30 = arith.constant 0 : i32
    %58 = arith.cmpi eq, %arg2, %c0_i32_30 : i32
    %59 = arith.andi %57, %58 : i1
    %60 = arith.extui %59 : i1 to i32
    %c0_i32_31 = arith.constant 0 : i32
    %61 = arith.cmpi ne, %60, %c0_i32_31 : i32
    scf.if %61 {
      %c0_32 = arith.constant 0 : index
      %c0_33 = arith.constant 0 : index
      %62 = vector.load %arg7[%c0_32, %c0_33] : memref<1x1xf32, #tpu.memory_space<vmem>>, vector<1x1xf32>
      %c0_34 = arith.constant 0 : index
      %c0_35 = arith.constant 0 : index
      %c0_36 = arith.constant 0 : index
      %63 = vector.load %arg5[%c0_34, %c0_35, %c0_36] : memref<1x1x1xf32, #tpu.memory_space<vmem>>, vector<1x1x1xf32>
      %64 = vector.shape_cast %63 : vector<1x1x1xf32> to vector<1x1xf32>
      %65 = vector.shape_cast %62 : vector<1x1xf32> to vector<1x1x1xf32>
      tpu.vector_store %arg5[%c0_34, %c0_35, %c0_36], %65 {strides = array<i32>} : memref<1x1x1xf32, #tpu.memory_space<vmem>>, vector<1x1x1xf32>,
      %c0_37 = arith.constant 0 : index
      %c0_38 = arith.constant 0 : index
      %66 = vector.load %arg8[%c0_37, %c0_38] : memref<1x1xf32, #tpu.memory_space<vmem>>, vector<1x1xf32>
      %c0_39 = arith.constant 0 : index
      %c0_40 = arith.constant 0 : index
      %c0_41 = arith.constant 0 : index
      %67 = vector.load %arg6[%c0_39, %c0_40, %c0_41] : memref<1x1x1xf32, #tpu.memory_space<vmem>>, vector<1x1x1xf32>
      %68 = vector.shape_cast %67 : vector<1x1x1xf32> to vector<1x1xf32>
      %69 = vector.shape_cast %66 : vector<1x1xf32> to vector<1x1x1xf32>
      tpu.vector_store %arg6[%c0_39, %c0_40, %c0_41], %69 {strides = array<i32>} : memref<1x1x1xf32, #tpu.memory_space<vmem>>, vector<1x1x1xf32>,
    } else {
    }
    return
  }
  func.func @transform_0(%arg0: i32, %arg1: i32, %arg2: i32) -> (i32, i32) {
    %c1_i32 = arith.constant 1 : i32
    %0 = arith.muli %arg0, %c1_i32 : i32
    %1 = arith.addi %0, %arg1 : i32
    %c0_i32 = arith.constant 0 : i32
    %2 = arith.minsi %1, %c0_i32 : i32
    %c0_i32_0 = arith.constant 0 : i32
    return %2, %arg2 : i32, i32
  }
  func.func @transform_1(%arg0: i32, %arg1: i32, %arg2: i32) -> (i32, i32) {
    %c1_i32 = arith.constant 1 : i32
    %0 = arith.muli %arg0, %c1_i32 : i32
    %1 = arith.addi %0, %arg1 : i32
    %c0_i32 = arith.constant 0 : i32
    %2 = arith.minsi %1, %c0_i32 : i32
    %c0_i32_0 = arith.constant 0 : i32
    %c0_i32_1 = arith.constant 0 : i32
    return %2, %c0_i32_0 : i32, i32
  }
  func.func @transform_2(%arg0: i32, %arg1: i32, %arg2: i32) -> (i32, i32, i32) {
    %c0_i32 = arith.constant 0 : i32
    %c0_i32_0 = arith.constant 0 : i32
    %c0_i32_1 = arith.constant 0 : i32
    return %arg0, %c0_i32, %c0_i32_0 : i32, i32, i32
  }
  func.func @transform_3(%arg0: i32, %arg1: i32, %arg2: i32) -> (i32, i32, i32) {
    %c0_i32 = arith.constant 0 : i32
    %c0_i32_0 = arith.constant 0 : i32
    %c0_i32_1 = arith.constant 0 : i32
    return %arg0, %c0_i32, %c0_i32_0 : i32, i32, i32
  }
}

</mosaic_0001>

<bundles_post_ra>
// kernel: tpu_custom_call.1
= control target key start
LH: loop header
LB: loop body
LE: loop exit
PB: predicated region body
PF: predicated region fallthrough
CT: control target
= control target key end

     0   :  { %9 = vsyncpa [#allocation8], 0  ;;  %vm118_vm0 = vcmask 261120   ;;  %s490_s0 = inlined_call_operand.vmem [shape: f32[16,32], index: 0, kind: input, shape index: {}]   ;;  %s491_s1 = inlined_call_operand.vmem [shape: s32[16,1], index: 1, kind: input, shape index: {}]   ;;  %s492_s2 = inlined_call_operand.hbm [shape: f32[1,1,1], index: 2, kind: output, shape index: {0}]   ;;  %s493_s3 = inlined_call_operand.hbm [shape: f32[1,1,1], index: 3, kind: output, shape index: {1}]  }
   0x1   :  { %v98_v0 = vld [vmem:[%s490_s0] sm:$0xff]  ;;  %v99_v1 = vld [vmem:[%s490_s0 + $0x8] sm:$0xff] }
   0x2   :  { %10 = vsyncpa [#allocation10], 0  ;;  %v119_v2 = vsel %vm118_vm0, %v98_v0, -inf  ;;  %v122_v3 = vsel %vm118_vm0, %v99_v1, -inf  ;;  %vm91_vm1 = vcmask 7168   ;;  %v368_v4 = vmov -inf  }
   0x3   :  { %120 = vmax.xlane.f32.xlu0 %v119_v2  ;;  %92 = vst.msk [vmem:[#allocation4] sm:$0xff] %vm91_vm1, %v368_v4  ;;  %93 = vst.msk [vmem:[#allocation4 + $0x8] sm:$0xff] %vm91_vm1, %v368_v4  ;;  %v369_v5 = vmov 0   ;;  %v370_v6 = vmov 0.0   ;;  %v100_v7 = vld [vmem:[%s491_s1] sm:$0xff]  ;;  %v101_v16 = vld [vmem:[%s491_s1 + $0x8] sm:$0xff]  ;;  %v169_v17 = vlaneseq }
   0x4   :  { %306 = vset.pattern.permute.xlu1 %v369_v5  ;;  %307 = vset.pattern.permute.xlu0 %v369_v5  ;;  %94 = vst.msk [vmem:[#allocation5] sm:$0xff] %vm91_vm1, %v370_v6  ;;  %95 = vst.msk [vmem:[#allocation5 + $0x8] sm:$0xff] %vm91_vm1, %v370_v6  ;;  %v371_v20 = vmov 0.0032258064   ;;  %vm201_vm4 = vcmp.ne.s32.totalorder %v101_v16, 0  ;;  %vm200_vm5 = vcmp.ne.s32.totalorder %v100_v7, 0 }
   0x5   :  { %96 = vst.msk [vmem:[#allocation6] sm:$0xff] %vm91_vm1, %v370_v6  ;;  %97 = vst.msk [vmem:[#allocation6 + $0x8] sm:$0xff] %vm91_vm1, %v370_v6  ;;  %v170_v18 = vand.u32 127, %v169_v17  ;;  %vm85_vm6 = vcmask 0   ;;  %v440_v41 = vsel %vm201_vm4, 1.0, %v370_v6  ;;  %v442_v42 = vsel %vm200_vm5, 1.0, %v370_v6 }
   0x6   :  { %86 = vst.msk [vmem:[#allocation2] sm:$0x1] %vm85_vm6, %v370_v6  ;;  %87 = vst.msk [vmem:[#allocation3] sm:$0x1] %vm85_vm6, %v370_v6  ;;  %v241_v43 = vsel %vm91_vm1, %v440_v41, 0.0  ;;  %v240_v44 = vsel %vm91_vm1, %v442_v42, 0.0 }
   0x7   :  { %123 = vmax.xlane.f32.xlu0 %v122_v3  ;;  %v242_v45 = vadd.f32 %v241_v43, %v240_v44  ;;  %s372_s1 = smov [#allocation9]  }
   0x8   :  { %s274_s19 = sshll.u32 %s372_s1, 4  ;;  %s275_s19 = int_to_ptr.vmem [resolvable:$true] %s274_s19 }
   0x9   :  { %v243_v46 = vrot.slane %v242_v45, 4  ;;  %s320_s20 = scalar_lea.vmem %s275_s19, 16  ;;  %s324_s21 = scalar_lea.vmem %s275_s19, 32 }
   0xa   :  { %v411_v8 = vld [vmem:[#allocation4] sm:$0xff]  ;;  %v416_v11 = vld [vmem:[#allocation4 + $0x8] sm:$0xff]  ;;  %p321_p0 = scmp.ne.s32.totalorder %s275_s19, %s320_s20  ;;  %p325_p1 = scmp.lt.s32.totalorder %s275_s19, %s275_s19 }
   0xb   :  { %v244_v47 = vadd.f32 %v243_v46, %v242_v45  ;;  %p326_p2 = scmp.lt.s32.totalorder %s324_s21, %s320_s20 }
   0xc   :  { %v183_v39 = vld [vmem:[#allocation6] sm:$0xff] }
   0xd   :  { %v245_v48 = vrot.slane %v244_v47, 2  ;;  %v239_v52 = vld [vmem:[#allocation3] sm:$0x1]  ;;  %p327_p3 = por %p326_p2, %p325_p1 }
   0xf   :  { %v246_v49 = vadd.f32 %v245_v48, %v244_v47  ;;  %p328_p4 = pnand %p327_p3, %p321_p0 }
  0x11   :  { %v247_v50 = vrot.slane %v246_v49, 1 }
  0x13   :  { %v248_v51 = vadd.f32 %v247_v50, %v246_v49 }
  0x15   :  { %v249_v53 = vadd.f32 %v248_v51, %v239_v52 }
  0x17   :  { %250 = vst.msk [vmem:[#allocation3] sm:$0x1] %vm85_vm6, %v249_v53 }
  0x1d   :  { %174 = vperm.xlu0 %307, %v100_v7  }
  0x1e   :  { %v256_v54 = vld [vmem:[#allocation3] sm:$0x1] }
  0x1f   :  { %257 = vst.msk [vmem:[#allocation9] sm:$0x1] %vm85_vm6, %v256_v54 }
  0x90   :  { %v121_v9 = vpop.xlane.xlu0 %120 }
  0x91   :  { %v414_v10 = vmax.f32 %v411_v8, %v121_v9 }
  0x93   :  { %v131_v12 = vsub.f32 %v411_v8, %v414_v10  ;;  %166 = vst.msk [vmem:[#allocation4] sm:$0xff] %vm91_vm1, %v414_v10  ;;  %141 = vperm.xlu1 %306, %v414_v10  }
  0x94   :  { %v124_v13 = vpop.xlane.xlu0 %123 }
  0x95   :  { %v424_v14 = vmax.f32 %v416_v11, %v124_v13 }
  0x97   :  { %v132_v15 = vsub.f32 %v416_v11, %v424_v14  ;;  %167 = vst.msk [vmem:[#allocation4 + $0x8] sm:$0xff] %vm91_vm1, %v424_v14  ;;  %146 = vperm.xlu1 %306, %v424_v14  }
  0x9b   :  { %177 = vperm.xlu1 %306, %v101_v16  }
  0x9c   :  { %v175_v19 = vpop.permute.xlu0 %174 }
  0x9d   :  { %vm179_vm2 = vcmp.eq.s32.totalorder %v170_v18, %v175_v19 }
  0x9e   :  { %v181_v21 = vsel %vm179_vm2, 0.9, %v371_v20 }
  0x9f   :  { %v185_v22 = vmul.f32 %v181_v21, %v98_v0 }
  0xa1   :  { %v187_v23 = vsel %vm118_vm0, %v185_v22, 0.0 }
  0xa2   :  { %188 = vadd.xlane.f32.xlu0 %v187_v23 }
 0x112   :  { %v142_v24 = vpop.permute.xlu1 %141 }
 0x113   :  { %v149_v25 = vsub.f32 %v98_v0, %v142_v24 }
 0x115   :  { %v151_v26 = vmul.f32 1.442695, %v149_v25 }
 0x116   :  { %v147_v27 = vpop.permute.xlu1 %146 }
 0x117   :  { %308 = vpow2.f32 %v151_v26  ;;  %v150_v28 = vsub.f32 %v99_v1, %v147_v27 }
 0x119   :  { %v153_v29 = vmul.f32 1.442695, %v150_v28 }
 0x11a   :  { %v178_v30 = vpop.permute.xlu1 %177 }
 0x11b   :  { %310 = vpow2.f32 %v153_v29  ;;  %vm180_vm3 = vcmp.eq.s32.totalorder %v170_v18, %v178_v30 }
 0x11c   :  { %v182_v33 = vsel %vm180_vm3, 0.9, %v371_v20 }
 0x11d   :  { %v186_v36 = vmul.f32 %v182_v33, %v99_v1 }
 0x11f   :  { %v190_v37 = vsel %vm118_vm0, %v186_v36, 0.0 }
 0x121   :  { %v309_v31 = vpop.eup %308 }
 0x122   :  { %v155_v32 = vsel %vm118_vm0, %v309_v31, 0.0 }
 0x123   :  { %156 = vadd.xlane.f32.xlu1 %v155_v32 }
 0x125   :  { %v311_v34 = vpop.eup %310 }
 0x126   :  { %v158_v35 = vsel %vm118_vm0, %v311_v34, 0.0 }
 0x127   :  { %159 = vadd.xlane.f32.xlu1 %v158_v35 }
 0x12b   :  { %191 = vadd.xlane.f32.xlu1 %v190_v37 }
 0x12f   :  { %v189_v38 = vpop.xlane.xlu0 %188 }
 0x130   :  { %v193_v40 = vadd.f32 %v189_v38, %v183_v39 }
 0x132   :  { %195 = vst.msk [vmem:[#allocation6] sm:$0xff] %vm91_vm1, %v193_v40 }
 0x133   :  { %331 = shalt.err (!%p328_p4)
}
 0x134   :  { %s332_s24 = scalar_lea.hbm %s493_s3, 16 }
 0x135   :  { %p333_p5 = scmp.ne.s32.totalorder %s493_s3, %s332_s24  ;;  %p336_p6 = scmp.lt.u32.totalorder %s332_s24, %s493_s3 }
 0x137   :  { %p338_p7 = pnand %p336_p6, %p333_p5 }
 0x139   :  { %341 = shalt.err (!%p338_p7)
}
 0x13a   :  { %277 = dma.vmem_to_hbm [thread:$0]  %s275_s19, 16, %s493_s3, [#allocation10]   ;;  %v133_v55 = vmul.f32 1.442695, %v131_v12  ;;  %v135_v56 = vmul.f32 1.442695, %v132_v15 }
 0x13b   :  { %v129_v58 = vld [vmem:[#allocation5] sm:$0xff]  ;;  %v130_v62 = vld [vmem:[#allocation5 + $0x8] sm:$0xff]  ;;  %v184_v3 = vld [vmem:[#allocation6 + $0x8] sm:$0xff]  ;;  %v218_v14 = vsub.f32 0.0, %v442_v42  ;;  %v219_v18 = vsub.f32 0.0, %v440_v41  ;;  %s373_s3 = smov [#allocation7]  }
 0x13c   :  { %312 = vpow2.f32 %v133_v55  ;;  %v214_v10 = vld [vmem:[#allocation4] sm:$0xff]  ;;  %v215_v17 = vld [vmem:[#allocation4 + $0x8] sm:$0xff]  ;;  %v226_v32 = vld [vmem:[#allocation2] sm:$0x1]  ;;  %s264_s4 = sshll.u32 %s373_s3, 4  ;;  %s265_s4 = int_to_ptr.vmem [resolvable:$true] %s264_s4 }
 0x13d   :  { %314 = vpow2.f32 %v135_v56  ;;  %v220_v11 = vld [vmem:[#allocation6] sm:$0xff]  ;;  %s342_s5 = scalar_lea.vmem %s265_s4, 16  ;;  %s346_s6 = scalar_lea.vmem %s265_s4, 32 }
 0x13e   :  { %p343_p8 = scmp.ne.s32.totalorder %s265_s4, %s342_s5  ;;  %p347_p9 = scmp.lt.s32.totalorder %s265_s4, %s265_s4 }
 0x13f   :  { %p348_p10 = scmp.lt.s32.totalorder %s346_s6, %s342_s5 }
 0x141   :  { %p349_p11 = por %p348_p10, %p347_p9 }
 0x143   :  { %p350_p12 = pnand %p349_p11, %p343_p8 }
 0x146   :  { %v313_v57 = vpop.eup %312 }
 0x147   :  { %v137_v59 = vmul.f32 %v313_v57, %v129_v58  ;;  %v315_v60 = vpop.eup %314 }
 0x148   :  { %v138_v0 = vmul.f32 %v315_v60, %v130_v62 }
 0x1b0   :  { %v157_v61 = vpop.xlane.xlu1 %156 }
 0x1b1   :  { %v161_v63 = vadd.f32 %v157_v61, %v137_v59 }
 0x1b3   :  { %164 = vst.msk [vmem:[#allocation5] sm:$0xff] %vm91_vm1, %v161_v63 }
 0x1b4   :  { %v160_v1 = vpop.xlane.xlu1 %159 }
 0x1b5   :  { %v162_v2 = vadd.f32 %v160_v1, %v138_v0 }
 0x1b7   :  { %165 = vst.msk [vmem:[#allocation5 + $0x8] sm:$0xff] %vm91_vm1, %v162_v2 }
 0x1b8   :  { %v192_v4 = vpop.xlane.xlu1 %191 }
 0x1b9   :  { %v194_v5 = vadd.f32 %v192_v4, %v184_v3 }
 0x1ba   :  { %v208_v6 = vld [vmem:[#allocation5] sm:$0xff] }
 0x1bb   :  { %316 = vlog2.f32 %v208_v6  ;;  %196 = vst.msk [vmem:[#allocation6 + $0x8] sm:$0xff] %vm91_vm1, %v194_v5 }
 0x1be   :  { %v209_v7 = vld [vmem:[#allocation5 + $0x8] sm:$0xff] }
 0x1bf   :  { %318 = vlog2.f32 %v209_v7 }
 0x1c2   :  { %v221_v20 = vld [vmem:[#allocation6 + $0x8] sm:$0xff] }
 0x1c5   :  { %v317_v8 = vpop.eup %316 }
 0x1c6   :  { %v211_v9 = vmul.f32 0.6931472, %v317_v8 }
 0x1c8   :  { %v216_v12 = vadd.f32 %v214_v10, %v211_v9 }
 0x1c9   :  { %v319_v13 = vpop.eup %318 }
 0x1ca   :  { %v213_v15 = vmul.f32 0.6931472, %v319_v13  ;;  %v222_v16 = vsub.f32 %v220_v11, %v216_v12 }
 0x1cc   :  { %v217_v19 = vadd.f32 %v215_v17, %v213_v15  ;;  %v224_v22 = vmul.f32 %v222_v16, %v218_v14 }
 0x1ce   :  { %v223_v21 = vsub.f32 %v221_v20, %v217_v19  ;;  %v227_v24 = vsel %vm91_vm1, %v224_v22, 0.0 }
 0x1d0   :  { %v225_v23 = vmul.f32 %v223_v21, %v219_v18 }
 0x1d2   :  { %v228_v25 = vsel %vm91_vm1, %v225_v23, 0.0 }
 0x1d3   :  { %v229_v26 = vadd.f32 %v228_v25, %v227_v24 }
 0x1d5   :  { %v230_v27 = vrot.slane %v229_v26, 4 }
 0x1d7   :  { %v231_v28 = vadd.f32 %v230_v27, %v229_v26 }
 0x1d9   :  { %v232_v29 = vrot.slane %v231_v28, 2 }
 0x1db   :  { %v233_v30 = vadd.f32 %v232_v29, %v231_v28 }
 0x1dd   :  { %v234_v31 = vrot.slane %v233_v30, 1 }
 0x1df   :  { %v235_v33 = vadd.f32 %v234_v31, %v233_v30 }
 0x1e1   :  { %v236_v34 = vadd.f32 %v235_v33, %v226_v32 }
 0x1e3   :  { %238 = vst.msk [vmem:[#allocation2] sm:$0x1] %vm85_vm6, %v236_v34 }
 0x1ea   :  { %v253_v35 = vld [vmem:[#allocation2] sm:$0x1] }
 0x1eb   :  { %255 = vst.msk [vmem:[#allocation7] sm:$0x1] %vm85_vm6, %v253_v35 }
 0x1ec   :  { %353 = shalt.err (!%p350_p12)
}
 0x1ed   :  { %s354_s9 = scalar_lea.hbm %s492_s2, 16 }
 0x1ee   :  { %p355_p13 = scmp.ne.s32.totalorder %s492_s2, %s354_s9  ;;  %p358_p0 = scmp.lt.u32.totalorder %s354_s9, %s492_s2 }
 0x1f0   :  { %p360_p1 = pnand %p358_p0, %p355_p13 }
 0x1f2   :  { %363 = shalt.err (!%p360_p1)
}
 0x1f3   :  { %267 = dma.vmem_to_hbm [thread:$0]  %s265_s4, 16, %s492_s2, [#allocation8]  }
 0x1f4   :  { %364 = dma.done.wait [#allocation8], 16  }
 0x1f5   :  { %365 = vsyncadd [#allocation8], 4294967280 }
 0x1f6   :  { %366 = dma.done.wait [#allocation10], 16  }
 0x1f7   :  { %367 = vsyncadd [#allocation10], 4294967280 }
 0x1f8   :  { %284 = vsyncpa [#allocation8], 1 }
 0x1f9   :  { %285 = vsyncpa [#allocation10], 1 }

</bundles_post_ra>
